<compile_context>
chip_gen: v7x
topology: tpu7x:2x2x1
jax: 0.10.0
libtpu: 0.0.40
codegen_flags: <defaults>
</compile_context>

<pallas_src>
import jax
import jax.numpy as jnp
from jax.experimental import pallas as pl
from jax.experimental.pallas import tpu as pltpu

IN_FEATURES = 348
LANE = 128
SUBLANE = 8


def _round_up(n, m):
    return ((n + m - 1) // m) * m


def statevalue_kernel(x_ref, w1_ref, b1_ref, w2_ref, b2_ref, o_ref):
    x = x_ref[...]
    w1 = w1_ref[...]
    # bf16 path: cast the MXU operand in-register (no extra HBM round trip).
    if x.dtype != w1.dtype:
        x = x.astype(w1.dtype)
    # lin1 on the MXU: (TB, 348) @ (348, Hp), f32 accumulation (Mosaic masks
    # the unaligned K=348 tile).
    h = jnp.dot(x, w1, preferred_element_type=jnp.float32)
    # bias + ReLU on the VPU in f32.
    h = jnp.maximum(h + b1_ref[...], 0.0)
    # Second linear (Hp -> 1) as VPU multiply + XLU lane reduction instead of an
    # N=1 matmul; b2 arrives as an SMEM scalar (free scalar path).
    o = jnp.sum(h * w2_ref[...], axis=-1, keepdims=True) + b2_ref[0]
    o_ref[...] = o.astype(o_ref.dtype)


def prepare_params(w1, b1, w2, b2, *, operand_dtype=jnp.float32):
    """One-time parameter prep (hoisted out of the per-call forward).

    w1: (348, H)   (transposed vs. PyTorch's lin1.weight)
    b1: (H,)
    w2: (H,) or (H, 1)
    b2: scalar / (1,) / (1, 1)

    Pads the hidden dim to a multiple of 128 (exact: padded columns give
    h = ReLU(0 + 0) = 0, multiplied by w2 = 0).  operand_dtype=jnp.bfloat16
    stores w1 in bf16 (MXU operand); bias/ReLU/reduction stay f32.
    """
    assert w1.shape[0] == IN_FEATURES
    H = w1.shape[1]
    Hp = _round_up(max(H, LANE), LANE)
    w1_p = jnp.zeros((IN_FEATURES, Hp), operand_dtype).at[:, :H].set(
        w1.astype(operand_dtype))
    b1_p = jnp.zeros((1, Hp), jnp.float32).at[0, :H].set(
        jnp.reshape(b1, (H,)).astype(jnp.float32))
    w2_p = jnp.zeros((1, Hp), jnp.float32).at[0, :H].set(
        jnp.reshape(w2, (-1,)).astype(jnp.float32))
    b2_p = jnp.reshape(jnp.asarray(b2), (1,)).astype(jnp.float32)
    return w1_p, b1_p, w2_p, b2_p


def state_value_forward(x, params, *, block_b=1024):
    """Forward pass of StateValue.  x: (B, 348); params from prepare_params.

    Returns (B, 1) float32.
    """
    w1_p, b1_p, w2_p, b2_p = params
    B = x.shape[0]
    assert x.shape[1] == IN_FEATURES
    Hp = w1_p.shape[1]

    # Small-B fast path folds into the same call: one tile, grid=(1,).
    TB = min(block_b, _round_up(B, SUBLANE))
    nb = pl.cdiv(B, TB)

    out = pl.pallas_call(
        statevalue_kernel,
        out_shape=jax.ShapeDtypeStruct((B, 1), jnp.float32),
        grid=(nb,),
        in_specs=[
            # Streamed x tiles straight from the caller's buffer (no pad copy):
            # last dim 348 equals the full array dim -> (8,128) rule satisfied.
            pl.BlockSpec((TB, IN_FEATURES), lambda i: (i, 0)),
            pl.BlockSpec((IN_FEATURES, Hp), lambda i: (0, 0)),   # resident W1
            pl.BlockSpec((1, Hp), lambda i: (0, 0)),             # resident b1
            pl.BlockSpec((1, Hp), lambda i: (0, 0)),             # resident w2 row
            pl.BlockSpec(memory_space=pltpu.MemorySpace.SMEM),   # b2 scalar
        ],
        out_specs=pl.BlockSpec((TB, 1), lambda i: (i, 0)),
        compiler_params=pltpu.CompilerParams(
            dimension_semantics=("parallel",),
        ),
    )(x, w1_p, b1_p, w2_p, b2_p)
    return out


def init_params(key, hidden_size):
    # Deterministic init mirroring nn.Linear's default: U(-1/sqrt(fan_in), ...).
    k1, k2, k3, k4 = jax.random.split(key, 4)
    bound1 = 1.0 / jnp.sqrt(jnp.float32(IN_FEATURES))
    bound2 = 1.0 / jnp.sqrt(jnp.float32(hidden_size))
    w1 = jax.random.uniform(k1, (IN_FEATURES, hidden_size), jnp.float32, -bound1, bound1)
    b1 = jax.random.uniform(k2, (hidden_size,), jnp.float32, -bound1, bound1)
    w2 = jax.random.uniform(k3, (hidden_size, 1), jnp.float32, -bound2, bound2)
    b2 = jax.random.uniform(k4, (1,), jnp.float32, -bound2, bound2)
    return w1, b1, w2, b2


if __name__ == "__main__":
    key = jax.random.PRNGKey(0)
    k_x, k_p = jax.random.split(key)

    batch = 8
    hidden_size = 32

    x = jax.random.normal(k_x, (batch, IN_FEATURES), jnp.float32)
    w1, b1, w2, b2 = init_params(k_p, hidden_size)

    # Parameter prep is done once (outside the per-step forward).
    # For v6e/v7x production use, pass operand_dtype=jnp.bfloat16 and loosen
    # tolerances accordingly (demo stays f32 for a tight numerical check).
    params = prepare_params(w1, b1, w2, b2, operand_dtype=jnp.float32)

    out = state_value_forward(x, params)
    out = jax.block_until_ready(out)

    # Pure-JAX reference check.
    ref = jnp.maximum(x @ w1 + b1[None, :], 0.0) @ w2 + b2[None, :]
    assert out.shape == (batch, 1)
    assert jnp.allclose(out, ref, atol=1e-4, rtol=1e-4)

    # TODO(synk): optim.Adam in the PyTorch module is training-side state, not
    # part of the forward pass, so it is intentionally not translated.

    print("KERNEL_OK")
</pallas_src>

<mosaic_0001>
module attributes {stable_mosaic.version = 11 : i64} {
  func.func @statevalue_kernel(%arg0: i32, %arg1: memref<8x348xf32, #tpu.memory_space<vmem>>, %arg2: memref<348x128xf32, #tpu.memory_space<vmem>>, %arg3: memref<1x128xf32, #tpu.memory_space<vmem>>, %arg4: memref<1x128xf32, #tpu.memory_space<vmem>>, %arg5: memref<1xf32, #tpu.memory_space<smem>>, %arg6: memref<8x1xf32, #tpu.memory_space<vmem>>) attributes {dimension_semantics = [#tpu.dimension_semantics<parallel>], iteration_bounds = array<i64: 1>, scalar_prefetch = 0 : i64, scratch_operands = 0 : i64, tpu.core_type = #tpu.core_type<tc>, window_params = [{transform_indices = @transform_0, window_bounds = array<i64: 8, 348>}, {pipeline_mode = #tpu.pipeline_mode<synchronous>, transform_indices = @transform_1, window_bounds = array<i64: 348, 128>}, {pipeline_mode = #tpu.pipeline_mode<synchronous>, transform_indices = @transform_2, window_bounds = array<i64: 1, 128>}, {pipeline_mode = #tpu.pipeline_mode<synchronous>, transform_indices = @transform_3, window_bounds = array<i64: 1, 128>}, {transform_indices = @transform_4, window_bounds = array<i64: 1>}, {transform_indices = @transform_5, window_bounds = array<i64: 8, 1>}]} {
    %c0 = arith.constant 0 : index
    %c0_0 = arith.constant 0 : index
    %0 = vector.load %arg1[%c0, %c0_0] : memref<8x348xf32, #tpu.memory_space<vmem>>, vector<8x348xf32>
    %c0_1 = arith.constant 0 : index
    %c0_2 = arith.constant 0 : index
    %1 = vector.load %arg2[%c0_1, %c0_2] : memref<348x128xf32, #tpu.memory_space<vmem>>, vector<348x128xf32>
    %cst = arith.constant dense<0.000000e+00> : vector<8x128xf32>
    %2 = tpu.matmul %0, %1, %cst {dimension_numbers = #tpu.dot_dimension_numbers<[1], [0], [0], [1], [0, 0, 1, 1], [], []>} : vector<8x348xf32>, vector<348x128xf32>, vector<8x128xf32> -> vector<8x128xf32>
    %c0_3 = arith.constant 0 : index
    %c0_4 = arith.constant 0 : index
    %3 = vector.load %arg3[%c0_3, %c0_4] : memref<1x128xf32, #tpu.memory_space<vmem>>, vector<1x128xf32>
    %4 = vector.broadcast %3 : vector<1x128xf32> to vector<8x128xf32>
    %5 = arith.addf %2, %4 : vector<8x128xf32>
    %cst_5 = arith.constant 0.000000e+00 : f32
    %6 = vector.broadcast %cst_5 : f32 to vector<8x128xf32>
    %7 = arith.maximumf %5, %6 : vector<8x128xf32>
    %c0_6 = arith.constant 0 : index
    %c0_7 = arith.constant 0 : index
    %8 = vector.load %arg4[%c0_6, %c0_7] : memref<1x128xf32, #tpu.memory_space<vmem>>, vector<1x128xf32>
    %9 = vector.broadcast %8 : vector<1x128xf32> to vector<8x128xf32>
    %10 = arith.mulf %7, %9 : vector<8x128xf32>
    %cst_8 = arith.constant dense<0.000000e+00> : vector<8xf32>
    %11 = vector.multi_reduction <add>, %10, %cst_8 [1] : vector<8x128xf32> to vector<8xf32>
    %12 = vector.shape_cast %11 : vector<8xf32> to vector<8x1xf32>
    %c0_9 = arith.constant 0 : index
    %13 = memref.load %arg5[%c0_9] : memref<1xf32, #tpu.memory_space<smem>>
    %14 = vector.broadcast %13 : f32 to vector<8x1xf32>
    %15 = arith.addf %12, %14 : vector<8x1xf32>
    %c0_10 = arith.constant 0 : index
    %c0_11 = arith.constant 0 : index
    %16 = vector.load %arg6[%c0_10, %c0_11] : memref<8x1xf32, #tpu.memory_space<vmem>>, vector<8x1xf32>
    tpu.vector_store %arg6[%c0_10, %c0_11], %15 {strides = array<i32>} : memref<8x1xf32, #tpu.memory_space<vmem>>, vector<8x1xf32>,
    return
  }
  func.func @transform_0(%arg0: i32) -> (i32, i32) {
    %c0_i32 = arith.constant 0 : i32
    %c0_i32_0 = arith.constant 0 : i32
    return %arg0, %c0_i32 : i32, i32
  }
  func.func @transform_1(%arg0: i32) -> (i32, i32) {
    %c0_i32 = arith.constant 0 : i32
    %c0_i32_0 = arith.constant 0 : i32
    %c0_i32_1 = arith.constant 0 : i32
    return %c0_i32, %c0_i32_0 : i32, i32
  }
  func.func @transform_2(%arg0: i32) -> (i32, i32) {
    %c0_i32 = arith.constant 0 : i32
    %c0_i32_0 = arith.constant 0 : i32
    %c0_i32_1 = arith.constant 0 : i32
    return %c0_i32, %c0_i32_0 : i32, i32
  }
  func.func @transform_3(%arg0: i32) -> (i32, i32) {
    %c0_i32 = arith.constant 0 : i32
    %c0_i32_0 = arith.constant 0 : i32
    %c0_i32_1 = arith.constant 0 : i32
    return %c0_i32, %c0_i32_0 : i32, i32
  }
  func.func @transform_4(%arg0: i32) -> i32 {
    %c0_i32 = arith.constant 0 : i32
    %c0_i32_0 = arith.constant 0 : i32
    return %c0_i32 : i32
  }
  func.func @transform_5(%arg0: i32) -> (i32, i32) {
    %c0_i32 = arith.constant 0 : i32
    %c0_i32_0 = arith.constant 0 : i32
    return %arg0, %c0_i32 : i32, i32
  }
}

</mosaic_0001>

<bundles_post_ra>
// kernel: tpu_custom_call.1
= control target key start
LH: loop header
LB: loop body
LE: loop exit
PB: predicated region body
PF: predicated region fallthrough
CT: control target
= control target key end

     0   :  { %11 = vsyncpa [#allocation4], 0  ;;  %s544_s0 = inlined_call_operand.hbm [shape: f32[8,348], index: 0, kind: input, shape index: {}]   ;;  %s545_s1 = inlined_call_operand.hbm [shape: f32[348,128], index: 1, kind: input, shape index: {}]   ;;  %s546_s2 = inlined_call_operand.vmem [shape: f32[1,128], index: 2, kind: input, shape index: {}]   ;;  %s547_s3 = inlined_call_operand.vmem [shape: f32[1,128], index: 3, kind: input, shape index: {}]   ;;  %s548_s4 = inlined_call_operand.<no memory space> [shape: f32[1], index: 4, kind: input, shape index: {}]   ;;  %s549_s5 = inlined_call_operand.vmem [shape: f32[8,1], index: 5, kind: output, shape index: {}]  }
   0x1   :  { %12 = vsyncpa [#allocation6], 0  ;;  %s457_s18 = smov [#allocation3]   ;;  %s458_s20 = smov [#allocation5]  }
   0x2   :  { %s19_s19 = sshll.u32 %s457_s18, 4  ;;  %s28_s21 = sshll.u32 %s458_s20, 4  ;;  %s20_s19 = int_to_ptr.vmem [resolvable:$true] %s19_s19  ;;  %s495_s21 = int_to_ptr.vmem [resolvable:$true] %s28_s21 }
   0x3   :  { %s409_s24 = scalar_lea.hbm %s544_s0, 384 }
   0x4   :  { %p410_p0 = scmp.ne.s32.totalorder %s544_s0, %s409_s24  ;;  %p413_p1 = scmp.lt.u32.totalorder %s409_s24, %s544_s0 }
   0x6   :  { %p415_p2 = pnand %p413_p1, %p410_p0 }
   0x8   :  { %418 = shalt.err (!%p415_p2)
}
   0x9   :  { %s419_s29 = scalar_lea.vmem %s20_s19, 384  ;;  %p424_p4 = scmp.lt.s32.totalorder %s20_s19, %s20_s19 }
   0xa   :  { %p420_p3 = scmp.ne.s32.totalorder %s20_s19, %s419_s29  ;;  %p425_p5 = scmp.lt.s32.totalorder %s419_s29, %s419_s29 }
   0xc   :  { %p426_p6 = por %p425_p5, %p424_p4 }
   0xe   :  { %p427_p7 = pnand %p426_p6, %p420_p3 }
  0x10   :  { %430 = shalt.err (!%p427_p7)
}
  0x11   :  { %22 = dma.hbm_to_vmem [thread:$0]  %s544_s0, 384, %s20_s19, [#allocation4]  }
  0x12   :  { %s431_s9 = scalar_lea.hbm %s545_s1, 5632 }
  0x13   :  { %p432_p8 = scmp.ne.s32.totalorder %s545_s1, %s431_s9  ;;  %p435_p9 = scmp.lt.u32.totalorder %s431_s9, %s545_s1 }
  0x15   :  { %p437_p10 = pnand %p435_p9, %p432_p8 }
  0x17   :  { %440 = shalt.err (!%p437_p10)
}
  0x18   :  { %s441_s14 = scalar_lea.vmem %s495_s21, 5632  ;;  %p446_p12 = scmp.lt.s32.totalorder %s495_s21, %s495_s21 }
  0x19   :  { %p442_p11 = scmp.ne.s32.totalorder %s495_s21, %s441_s14  ;;  %p447_p13 = scmp.lt.s32.totalorder %s441_s14, %s441_s14 }
  0x1b   :  { %p448_p0 = por %p447_p13, %p446_p12 }
  0x1d   :  { %p449_p1 = pnand %p448_p0, %p442_p11 }
  0x1f   :  { %452 = shalt.err (!%p449_p1)
}
  0x20   :  { %s459_s0 = smov 128   ;;  %s460_s15 = smov 8  }
  0x21   :  { %34 = dma.hbm_to_vmem [thread:$0]  %s545_s1, 5632, %s495_s21, [#allocation6], %s459_s0, %s459_s0, %s460_s15  }
  0x22   :  { %453 = dma.done.wait [#allocation4], 384  }
  0x23   :  { %454 = vsyncadd [#allocation4], 4294966912 }
  0x24   :  { %455 = dma.done.wait [#allocation6], 5632  }
  0x25   :  { %456 = vsyncadd [#allocation6], 4294961664  ;;  %v461_v0 = vmov 0.0|0.0   ;;  %vm462_vm0 = vmmov 0   ;;  %v463_v1 = vmov 0.0   ;;  %v66_v2 = vld [vmem:[#allocation5 + $0x80] sm:$0xff] }
  0x26   :  { %382 = vmatprep.subr.bf16.mxu1 %v461_v0  ;;  %347 = vmatprep.mubr.msk.f32.mxu1 %vm462_vm0, %v463_v1  ;;  %v67_v3 = vld [vmem:[#allocation5 + $0x88] sm:$0xff]  ;;  %v50_v4 = vld [vmem:[#allocation5] sm:$0xff]  ;;  %v68_v7 = vld [vmem:[#allocation5 + $0x90] sm:$0xff]  ;;  %vm105_vm1 = vcmask 1043456   ;;  %vm464_vm2 = vmmov 1   ;;  %vm101_vm4 = vcmask 752640  }
  0x27   :  { %v350_v5 = vpack.c.bf16 %v67_v3, %v66_v2  ;;  %v51_v6 = vld [vmem:[#allocation5 + $0x8] sm:$0xff]  ;;  %v69_v8 = vld [vmem:[#allocation5 + $0x98] sm:$0xff]  ;;  %v52_v11 = vld [vmem:[#allocation5 + $0x10] sm:$0xff]  ;;  %vm263_vm5 = vcmask 7168  }
  0x28   :  { %v352_v9 = vpack.c.bf16 %v51_v6, %v50_v4  ;;  %v354_v10 = vpack.c.bf16 %v69_v8, %v68_v7  ;;  %v53_v12 = vld [vmem:[#allocation5 + $0x18] sm:$0xff]  ;;  %v70_v13 = vld [vmem:[#allocation5 + $0xa0] sm:$0xff]  ;;  %v71_v14 = vld [vmem:[#allocation5 + $0xa8] sm:$0xff] }
  0x29   :  { %351 = vmatprep.subr.bf16.mxu0 %v350_v5  ;;  %v356_v15 = vpack.c.bf16 %v53_v12, %v52_v11  ;;  %v54_v16 = vld [vmem:[#allocation5 + $0x20] sm:$0xff]  ;;  %v358_v17 = vpack.c.bf16 %v71_v14, %v70_v13  ;;  %v55_v18 = vld [vmem:[#allocation5 + $0x28] sm:$0xff]  ;;  %v72_v21 = vld [vmem:[#allocation5 + $0xb0] sm:$0xff] }
  0x2a   :  { %353 = vmatpush3.bf16.msra.mxu0 %v352_v9  ;;  %v82_v19 = vld [vmem:[#allocation5 + $0x100] sm:$0xff]  ;;  %v83_v20 = vld [vmem:[#allocation5 + $0x108] sm:$0xff]  ;;  %v73_v22 = vld [vmem:[#allocation5 + $0xb8] sm:$0xff]  ;;  %v360_v26 = vpack.c.bf16 %v55_v18, %v54_v16  ;;  %v261_v18 = vstv %s548_s4 }
  0x2b   :  { %355 = vmatprep.subr.bf16.mxu0 %v354_v10  ;;  %v383_v23 = vpack.c.bf16 %v83_v20, %v82_v19  ;;  %v84_v24 = vld [vmem:[#allocation5 + $0x110] sm:$0xff]  ;;  %v85_v25 = vld [vmem:[#allocation5 + $0x118] sm:$0xff]  ;;  %v362_v29 = vpack.c.bf16 %v73_v22, %v72_v21  ;;  %v86_v31 = vld [vmem:[#allocation5 + $0x120] sm:$0xff] }
  0x2c   :  { %v56_v27 = vld [vmem:[#allocation5 + $0x30] sm:$0xff]  ;;  %v386_v28 = vpack.c.bf16 %v85_v25, %v84_v24  ;;  %v57_v30 = vld [vmem:[#allocation5 + $0x38] sm:$0xff]  ;;  %v87_v32 = vld [vmem:[#allocation5 + $0x128] sm:$0xff] }
  0x2d   :  { %384 = vmatpush3.bf16.msra.mxu1 %v383_v23  ;;  %v74_v33 = vld [vmem:[#allocation5 + $0xc0] sm:$0xff]  ;;  %v75_v34 = vld [vmem:[#allocation5 + $0xc8] sm:$0xff]  ;;  %v364_v35 = vpack.c.bf16 %v57_v30, %v56_v27  ;;  %v389_v37 = vpack.c.bf16 %v87_v32, %v86_v31  ;;  %v88_v40 = vld [vmem:[#allocation5 + $0x130] sm:$0xff] }
  0x2e   :  { %357 = vmatpush3.bf16.msra.mxu0 %v356_v15  ;;  %385 = vmatprep.subr.bf16.mxu1 %v461_v0  ;;  %v58_v36 = vld [vmem:[#allocation5 + $0x40] sm:$0xff]  ;;  %v366_v38 = vpack.c.bf16 %v75_v34, %v74_v33  ;;  %v59_v39 = vld [vmem:[#allocation5 + $0x48] sm:$0xff]  ;;  %v89_v41 = vld [vmem:[#allocation5 + $0x138] sm:$0xff] }
  0x2f   :  { %359 = vmatprep.subr.bf16.mxu0 %v358_v17  ;;  %v76_v42 = vld [vmem:[#allocation5 + $0xd0] sm:$0xff]  ;;  %v77_v43 = vld [vmem:[#allocation5 + $0xd8] sm:$0xff]  ;;  %v368_v45 = vpack.c.bf16 %v59_v39, %v58_v36  ;;  %v392_v47 = vpack.c.bf16 %v89_v41, %v88_v40  ;;  %v90_v50 = vld [vmem:[#allocation5 + $0x140] sm:$0xff] }
  0x30   :  { %v48_v44 = vld [vmem:[#allocation3 + $0x8] sm:$0xff]  ;;  %v370_v48 = vpack.c.bf16 %v77_v43, %v76_v42  ;;  %v61_v49 = vld [vmem:[#allocation5 + $0x58] sm:$0xff]  ;;  %v91_v51 = vld [vmem:[#allocation5 + $0x148] sm:$0xff] }
  0x31   :  { %387 = vmatpush3.bf16.msra.mxu1 %v386_v28  ;;  %173 = vmatprep.mubr.f32.mxu0 %v48_v44  ;;  %v60_v46 = vld [vmem:[#allocation5 + $0x50] sm:$0xff]  ;;  %v78_v52 = vld [vmem:[#allocation5 + $0xe0] sm:$0xff]  ;;  %v79_v53 = vld [vmem:[#allocation5 + $0xe8] sm:$0xff]  ;;  %v395_v56 = vpack.c.bf16 %v91_v51, %v90_v50 }
  0x32   :  { %361 = vmatpush3.bf16.msra.mxu0 %v360_v26  ;;  %388 = vmatprep.subr.bf16.mxu1 %v461_v0  ;;  %v372_v54 = vpack.c.bf16 %v61_v49, %v60_v46  ;;  %v62_v55 = vld [vmem:[#allocation5 + $0x60] sm:$0xff]  ;;  %v374_v57 = vpack.c.bf16 %v79_v53, %v78_v52  ;;  %v63_v58 = vld [vmem:[#allocation5 + $0x68] sm:$0xff]  ;;  %v92_v59 = vld [vmem:[#allocation5 + $0x150] sm:$0xff] }
  0x33   :  { %363 = vmatprep.subr.bf16.mxu0 %v362_v29  ;;  %v93_v60 = vld [vmem:[#allocation5 + $0x158] sm:$0xf]  ;;  %v80_v61 = vld [vmem:[#allocation5 + $0xf0] sm:$0xff]  ;;  %v376_v63 = vpack.c.bf16 %v63_v58, %v62_v55  ;;  %vm399_vm3 = vmpackc.low %vm105_vm1, %vm464_vm2 }
  0x34   :  { %v81_v62 = vld [vmem:[#allocation5 + $0xf8] sm:$0xff]  ;;  %v398_v1 = vpack.c.bf16 %v93_v60, %v92_v59  ;;  %v64_v3 = vld [vmem:[#allocation5 + $0x70] sm:$0xff]  ;;  %v47_v7 = vld [vmem:[#allocation3] sm:$0xff] }
  0x35   :  { %390 = vmatpush3.bf16.msra.mxu1 %v389_v37  ;;  %v378_v2 = vpack.c.bf16 %v81_v62, %v80_v61  ;;  %v65_v4 = vld [vmem:[#allocation5 + $0x78] sm:$0xff]  ;;  %v274_v15 = vld [vmem:[%s547_s3] ss:$0 sm:$0xff] }
  0x36   :  { %365 = vmatpush3.bf16.msra.mxu0 %v364_v35  ;;  %391 = vmatprep.subr.bf16.mxu1 %v461_v0  ;;  %v380_v5 = vpack.c.bf16 %v65_v4, %v64_v3  ;;  %v49_v6 = vld [vmem:[#allocation3 + $0x10] sm:$0xff] }
  0x37   :  { %367 = vmatprep.subr.bf16.mxu0 %v366_v38 }
  0x39   :  { %393 = vmatpush3.bf16.msra.mxu1 %v392_v47 }
  0x3a   :  { %369 = vmatpush3.bf16.msra.mxu0 %v368_v45  ;;  %394 = vmatprep.subr.bf16.mxu1 %v461_v0 }
  0x3b   :  { %371 = vmatprep.subr.bf16.mxu0 %v370_v48 }
  0x3d   :  { %396 = vmatpush3.bf16.msra.mxu1 %v395_v56 }
  0x3e   :  { %373 = vmatpush3.bf16.msra.mxu0 %v372_v54  ;;  %397 = vmatprep.subr.bf16.mxu1 %v461_v0  ;;  %v271_v0 = vld [vmem:[%s546_s2] ss:$0 sm:$0xff] }
  0x3f   :  { %375 = vmatprep.subr.bf16.mxu0 %v374_v57 }
  0x41   :  { %400 = vmatpush3.bf16.msk.msra.mxu1 %vm399_vm3, %v398_v1 }
  0x42   :  { %377 = vmatpush3.bf16.msra.mxu0 %v376_v63 }
  0x43   :  { %379 = vmatprep.subr.bf16.mxu0 %v378_v2 }
  0x44   :  { %348 = vmatmul.mubr.msk.f32.vlgmr.msra.gmra.mrb[0].mxu1 %vm101_vm4, %v49_v6 }
  0x46   :  { %381 = vmatpush3.bf16.msra.mxu0 %v380_v5 }
  0x49   :  { %174 = vmatmul.mubr.f32.vlgmr.msra.gmra.mrb[0].mxu0 %v47_v7 }
 0x117   :  { %v245_v8 = vpop.f32.mrb[0].mxu1 }
 0x118   :  { %v349_v9 = vpop.f32.mrb[1].mxu1 }
 0x11c   :  { %v307_v10 = vpop.f32.mrb[0].mxu0 }
 0x11d   :  { %v308_v11 = vpop.f32.mrb[1].mxu0 }
 0x11e   :  { %v309_v12 = vadd.f32 %v308_v11, %v307_v10 }
 0x120   :  { %v176_v13 = vadd.f32 %v309_v12, %v271_v0 }
 0x122   :  { %v246_v14 = vadd.f32 %v245_v8, %v176_v13 }
 0x124   :  { %v249_v16 = vmax.f32 %v246_v14, 0.0 }
 0x126   :  { %v257_v17 = vmul.f32 %v274_v15, %v249_v16 }
 0x128   :  { %258 = vadd.xlane.f32.xlu0 %v257_v17 }
 0x1b5   :  { %v259_v19 = vpop.xlane.xlu0 %258 }
 0x1b6   :  { %v262_v20 = vadd.f32 %v261_v18, %v259_v19 }
 0x1b8   :  { %264 = vst.msk [vmem:[%s549_s5] sm:$0xff] %vm263_vm5, %v262_v20 }
 0x1b9   :  { %269 = vsyncpa [#allocation4], 1 }
 0x1ba   :  { %270 = vsyncpa [#allocation6], 1 }

</bundles_post_ra>
